<compile_context>
chip_gen: v6e
topology: v6e:2x2x1
jax: 0.10.0
libtpu: 0.0.40
codegen_flags: <defaults>
</compile_context>

<pallas_src>
import functools
import math

import jax
import jax.numpy as jnp
from jax import lax
from jax.experimental import pallas as pl
from jax.experimental.pallas import tpu as pltpu


def mha1d_kernel(x_ref, wqkv_ref, bqkv_ref, wdh_ref, bd_ref, o_ref, xpad_ref,
                 *, num_heads, depth):
    f_in = x_ref.shape[-1]                       # 37
    c = num_heads * depth                        # in_channels

    # --- Pad x (S, F) -> (S, F_pad) in a bf16 VMEM scratch.  Pad columns are
    # zeroed and the matching weight rows are zero, so this is numerically
    # exact.  (Unconditional zeroing: trivially cheap, and safe if the
    # parallel batch axis is split across cores.)
    xpad_ref[...] = jnp.zeros_like(xpad_ref)
    xpad_ref[:, :f_in] = x_ref[...].astype(xpad_ref.dtype)
    xp = xpad_ref[...]                           # (S, F_pad) bf16

    # --- Fused QKV projection: one MXU matmul, f32 accumulation.
    # 1/sqrt(depth) is pre-folded into the q slice of wqkv/bqkv.
    qkv = jnp.dot(xp, wqkv_ref[...], preferred_element_type=jnp.float32)
    qkv = qkv + bqkv_ref[...]                    # (S, 3C) f32

    # --- Head-major operands (H, S, D); all heads batched per MXU call.
    def split_heads(t, dtype):
        return jnp.stack(
            [t[:, h * depth:(h + 1) * depth] for h in range(num_heads)],
            axis=0).astype(dtype)

    q = split_heads(qkv[:, :c], jnp.bfloat16)          # (H, S, D)
    k = split_heads(qkv[:, c:2 * c], jnp.bfloat16)     # (H, S, D)
    v = split_heads(qkv[:, 2 * c:], jnp.bfloat16)      # (H, S, D)

    # logits for all heads at once: 'hqd,hkd->hqk'
    logits = lax.dot_general(q, k, (((2,), (2,)), ((0,), (0,))),
                             preferred_element_type=jnp.float32)   # (H,S,S)

    # Numerically stable f32 softmax; reciprocal on the EUP slot.
    logits = logits - jnp.max(logits, axis=-1, keepdims=True)
    p = jnp.exp(logits)
    attn = p * pl.reciprocal(jnp.sum(p, axis=-1, keepdims=True), approx=True)

    # 'hqk,hkd->hqd'
    ctx = lax.dot_general(attn.astype(jnp.bfloat16), v,
                          (((2,), (1,)), ((0,), (0,))),
                          preferred_element_type=jnp.float32)       # (H,S,D)

    # Output dense accumulated head-major (no lane-axis concat):
    # 'hqd,hdc->hqc' then sum over heads.
    dense = lax.dot_general(ctx.astype(jnp.bfloat16), wdh_ref[...],
                            (((2,), (1,)), ((0,), (0,))),
                            preferred_element_type=jnp.float32)     # (H,S,C)
    out = jnp.sum(dense, axis=0) + bd_ref[...]                      # (S, C)

    o_ref[...] = out.astype(o_ref.dtype)


def prepare_params(params, num_heads):
    """One-time parameter prep (hoisted out of the per-call hot path):
    pad F to a multiple of 8, fuse QKV weights/biases, fold the 1/sqrt(depth)
    scale into q, reshape Wd head-major, cast MXU weights to bf16."""
    f_in, c = params["wq"].shape
    depth = c // num_heads
    inv_scale = 1.0 / math.sqrt(depth)
    f_pad = ((f_in + 7) // 8) * 8

    def pad_f(w):
        return jnp.pad(w, ((0, f_pad - f_in), (0, 0)))

    wqkv = jnp.concatenate(
        [pad_f(params["wq"]) * inv_scale, pad_f(params["wk"]), pad_f(params["wv"])],
        axis=1).astype(jnp.bfloat16)                                 # (F_pad, 3C)
    bqkv = jnp.concatenate(
        [params["bq"] * inv_scale, params["bk"], params["bv"]],
        axis=1).astype(jnp.float32)                                  # (1, 3C)
    wdh = params["wd"].reshape(num_heads, depth, c).astype(jnp.bfloat16)  # (H,D,C)
    bd = params["bd"].astype(jnp.float32)                            # (1, C)
    return {"wqkv": wqkv, "bqkv": bqkv, "wdh": wdh, "bd": bd}


def multi_head_attention_1d(x, prepped, *, num_heads):
    B, S, F = x.shape
    f_pad, c3 = prepped["wqkv"].shape
    C = c3 // 3
    depth = C // num_heads

    kernel = functools.partial(mha1d_kernel, num_heads=num_heads, depth=depth)

    return pl.pallas_call(
        kernel,
        out_shape=jax.ShapeDtypeStruct((B, S, C), x.dtype),
        grid=(B,),
        in_specs=[
            pl.BlockSpec((None, S, F), lambda b: (b, 0, 0)),         # x
            pl.BlockSpec((f_pad, c3), lambda b: (0, 0)),             # Wqkv (bf16)
            pl.BlockSpec((1, c3), lambda b: (0, 0)),                 # bqkv (f32)
            pl.BlockSpec((num_heads, depth, C), lambda b: (0, 0, 0)),  # Wd head-major
            pl.BlockSpec((1, C), lambda b: (0, 0)),                  # bd
        ],
        out_specs=pl.BlockSpec((None, S, C), lambda b: (b, 0, 0)),
        scratch_shapes=[pltpu.VMEM((S, f_pad), jnp.bfloat16)],       # padded-x buffer
        compiler_params=pltpu.CompilerParams(
            dimension_semantics=("parallel",)),
    )(x, prepped["wqkv"], prepped["bqkv"], prepped["wdh"], prepped["bd"])


def reference_mha1d(x, params, num_heads):
    """Plain-JAX (f32) replica of the PyTorch forward, for verification."""
    B, S, F = x.shape
    C = params["wq"].shape[1]
    depth = C // num_heads

    q = x @ params["wq"] + params["bq"]
    k = x @ params["wk"] + params["bk"]
    v = x @ params["wv"] + params["bv"]

    def split_heads(t):
        return t.reshape(B, S, num_heads, depth).transpose(0, 2, 1, 3)

    q, k, v = split_heads(q), split_heads(k), split_heads(v)
    logits = jnp.einsum("bhqd,bhkd->bhqk", q, k) / jnp.sqrt(jnp.float32(depth))
    attn = jax.nn.softmax(logits, axis=-1)
    out = jnp.einsum("bhqk,bhkd->bhqd", attn, v)
    out = out.transpose(0, 2, 1, 3).reshape(B, S, C)
    return out @ params["wd"] + params["bd"]


if __name__ == "__main__":
    B, S, F = 2, 8, 37          # batch, sequence length, Linear(37, C) input dim
    C, H = 32, 4                # in_channels, num_heads  (depth = 8)

    key = jax.random.PRNGKey(0)
    keys = jax.random.split(key, 9)

    x = jax.random.normal(keys[0], (B, S, F), dtype=jnp.float32)

    def init_w(k, shape):
        return 0.1 * jax.random.normal(k, shape, dtype=jnp.float32)

    params = {
        "wq": init_w(keys[1], (F, C)), "bq": init_w(keys[2], (1, C)),
        "wk": init_w(keys[3], (F, C)), "bk": init_w(keys[4], (1, C)),
        "wv": init_w(keys[5], (F, C)), "bv": init_w(keys[6], (1, C)),
        "wd": init_w(keys[7], (C, C)), "bd": init_w(keys[8], (1, C)),
    }

    # One-time weight fusion / padding / bf16 cast (outside the hot path).
    prepped = prepare_params(params, num_heads=H)

    fwd = jax.jit(functools.partial(multi_head_attention_1d, num_heads=H))
    out = fwd(x, prepped)
    out = jax.block_until_ready(out)

    ref = reference_mha1d(x, params, num_heads=H)
    assert out.shape == (B, S, C)
    # bf16 MXU operands + approx reciprocal => compare against the f32
    # reference with a correspondingly relaxed (but structure-error-catching)
    # tolerance.
    assert jnp.allclose(out, ref, atol=2e-2, rtol=2e-2), "mismatch vs JAX reference"

    print("KERNEL_OK")
</pallas_src>

<mosaic_0001>
module attributes {stable_mosaic.version = 11 : i64} {
  func.func @mha1d_kernel(%arg0: i32, %arg1: memref<1x8x37xf32, #tpu.memory_space<vmem>>, %arg2: memref<40x96xbf16, #tpu.memory_space<vmem>>, %arg3: memref<1x96xf32, #tpu.memory_space<vmem>>, %arg4: memref<4x8x32xbf16, #tpu.memory_space<vmem>>, %arg5: memref<1x32xf32, #tpu.memory_space<vmem>>, %arg6: memref<1x8x32xf32, #tpu.memory_space<vmem>>, %arg7: memref<8x40xbf16, #tpu.memory_space<vmem>>) attributes {dimension_semantics = [#tpu.dimension_semantics<parallel>], iteration_bounds = array<i64: 2>, scalar_prefetch = 0 : i64, scratch_operands = 1 : i64, tpu.core_type = #tpu.core_type<tc>, window_params = [{transform_indices = @transform_0, window_bounds = array<i64: 1, 8, 37>}, {pipeline_mode = #tpu.pipeline_mode<synchronous>, transform_indices = @transform_1, window_bounds = array<i64: 40, 96>}, {pipeline_mode = #tpu.pipeline_mode<synchronous>, transform_indices = @transform_2, window_bounds = array<i64: 1, 96>}, {pipeline_mode = #tpu.pipeline_mode<synchronous>, transform_indices = @transform_3, window_bounds = array<i64: 4, 8, 32>}, {pipeline_mode = #tpu.pipeline_mode<synchronous>, transform_indices = @transform_4, window_bounds = array<i64: 1, 32>}, {transform_indices = @transform_5, window_bounds = array<i64: 1, 8, 32>}]} {
    %cst = arith.constant 0.000000e+00 : bf16
    %0 = vector.broadcast %cst : bf16 to vector<8x40xbf16>
    %c0 = arith.constant 0 : index
    %c0_0 = arith.constant 0 : index
    %1 = vector.load %arg7[%c0, %c0_0] : memref<8x40xbf16, #tpu.memory_space<vmem>>, vector<8x40xbf16>
    tpu.vector_store %arg7[%c0, %c0_0], %0 {strides = array<i32>} : memref<8x40xbf16, #tpu.memory_space<vmem>>, vector<8x40xbf16>,
    %c0_1 = arith.constant 0 : index
    %c0_2 = arith.constant 0 : index
    %c0_3 = arith.constant 0 : index
    %2 = vector.load %arg1[%c0_1, %c0_2, %c0_3] : memref<1x8x37xf32, #tpu.memory_space<vmem>>, vector<1x8x37xf32>
    %3 = vector.shape_cast %2 : vector<1x8x37xf32> to vector<8x37xf32>
    %4 = arith.truncf %3 : vector<8x37xf32> to vector<8x37xbf16>
    %c0_4 = arith.constant 0 : index
    %c0_5 = arith.constant 0 : index
    %5 = vector.load %arg7[%c0_4, %c0_5] : memref<8x40xbf16, #tpu.memory_space<vmem>>, vector<8x37xbf16>
    tpu.vector_store %arg7[%c0_4, %c0_5], %4 {strides = array<i32>} : memref<8x40xbf16, #tpu.memory_space<vmem>>, vector<8x37xbf16>,
    %c0_6 = arith.constant 0 : index
    %c0_7 = arith.constant 0 : index
    %6 = vector.load %arg7[%c0_6, %c0_7] : memref<8x40xbf16, #tpu.memory_space<vmem>>, vector<8x40xbf16>
    %c0_8 = arith.constant 0 : index
    %c0_9 = arith.constant 0 : index
    %7 = vector.load %arg2[%c0_8, %c0_9] : memref<40x96xbf16, #tpu.memory_space<vmem>>, vector<40x96xbf16>
    %cst_10 = arith.constant dense<0.000000e+00> : vector<8x96xf32>
    %8 = tpu.matmul %6, %7, %cst_10 {dimension_numbers = #tpu.dot_dimension_numbers<[1], [0], [0], [1], [0, 0, 1, 1], [], []>} : vector<8x40xbf16>, vector<40x96xbf16>, vector<8x96xf32> -> vector<8x96xf32>
    %c0_11 = arith.constant 0 : index
    %c0_12 = arith.constant 0 : index
    %9 = vector.load %arg3[%c0_11, %c0_12] : memref<1x96xf32, #tpu.memory_space<vmem>>, vector<1x96xf32>
    %10 = vector.broadcast %9 : vector<1x96xf32> to vector<8x96xf32>
    %11 = arith.addf %8, %10 : vector<8x96xf32>
    %12 = vector.extract_strided_slice %11 {offsets = [0, 0], sizes = [8, 32], strides = [1, 1]} : vector<8x96xf32> to vector<8x32xf32>
    %13 = vector.extract_strided_slice %12 {offsets = [0, 0], sizes = [8, 8], strides = [1, 1]} : vector<8x32xf32> to vector<8x8xf32>
    %14 = vector.extract_strided_slice %12 {offsets = [0, 8], sizes = [8, 8], strides = [1, 1]} : vector<8x32xf32> to vector<8x8xf32>
    %15 = vector.extract_strided_slice %12 {offsets = [0, 16], sizes = [8, 8], strides = [1, 1]} : vector<8x32xf32> to vector<8x8xf32>
    %16 = vector.extract_strided_slice %12 {offsets = [0, 24], sizes = [8, 8], strides = [1, 1]} : vector<8x32xf32> to vector<8x8xf32>
    %17 = vector.shape_cast %13 : vector<8x8xf32> to vector<1x8x8xf32>
    %18 = vector.shape_cast %14 : vector<8x8xf32> to vector<1x8x8xf32>
    %19 = vector.shape_cast %15 : vector<8x8xf32> to vector<1x8x8xf32>
    %20 = vector.shape_cast %16 : vector<8x8xf32> to vector<1x8x8xf32>
    %21 = tpu.concatenate %17, %18, %19, %20 in 0 : vector<1x8x8xf32>, vector<1x8x8xf32>, vector<1x8x8xf32>, vector<1x8x8xf32> -> vector<4x8x8xf32>
    %22 = arith.truncf %21 : vector<4x8x8xf32> to vector<4x8x8xbf16>
    %23 = vector.extract_strided_slice %11 {offsets = [0, 32], sizes = [8, 32], strides = [1, 1]} : vector<8x96xf32> to vector<8x32xf32>
    %24 = vector.extract_strided_slice %23 {offsets = [0, 0], sizes = [8, 8], strides = [1, 1]} : vector<8x32xf32> to vector<8x8xf32>
    %25 = vector.extract_strided_slice %23 {offsets = [0, 8], sizes = [8, 8], strides = [1, 1]} : vector<8x32xf32> to vector<8x8xf32>
    %26 = vector.extract_strided_slice %23 {offsets = [0, 16], sizes = [8, 8], strides = [1, 1]} : vector<8x32xf32> to vector<8x8xf32>
    %27 = vector.extract_strided_slice %23 {offsets = [0, 24], sizes = [8, 8], strides = [1, 1]} : vector<8x32xf32> to vector<8x8xf32>
    %28 = vector.shape_cast %24 : vector<8x8xf32> to vector<1x8x8xf32>
    %29 = vector.shape_cast %25 : vector<8x8xf32> to vector<1x8x8xf32>
    %30 = vector.shape_cast %26 : vector<8x8xf32> to vector<1x8x8xf32>
    %31 = vector.shape_cast %27 : vector<8x8xf32> to vector<1x8x8xf32>
    %32 = tpu.concatenate %28, %29, %30, %31 in 0 : vector<1x8x8xf32>, vector<1x8x8xf32>, vector<1x8x8xf32>, vector<1x8x8xf32> -> vector<4x8x8xf32>
    %33 = arith.truncf %32 : vector<4x8x8xf32> to vector<4x8x8xbf16>
    %34 = vector.extract_strided_slice %11 {offsets = [0, 64], sizes = [8, 32], strides = [1, 1]} : vector<8x96xf32> to vector<8x32xf32>
    %35 = vector.extract_strided_slice %34 {offsets = [0, 0], sizes = [8, 8], strides = [1, 1]} : vector<8x32xf32> to vector<8x8xf32>
    %36 = vector.extract_strided_slice %34 {offsets = [0, 8], sizes = [8, 8], strides = [1, 1]} : vector<8x32xf32> to vector<8x8xf32>
    %37 = vector.extract_strided_slice %34 {offsets = [0, 16], sizes = [8, 8], strides = [1, 1]} : vector<8x32xf32> to vector<8x8xf32>
    %38 = vector.extract_strided_slice %34 {offsets = [0, 24], sizes = [8, 8], strides = [1, 1]} : vector<8x32xf32> to vector<8x8xf32>
    %39 = vector.shape_cast %35 : vector<8x8xf32> to vector<1x8x8xf32>
    %40 = vector.shape_cast %36 : vector<8x8xf32> to vector<1x8x8xf32>
    %41 = vector.shape_cast %37 : vector<8x8xf32> to vector<1x8x8xf32>
    %42 = vector.shape_cast %38 : vector<8x8xf32> to vector<1x8x8xf32>
    %43 = tpu.concatenate %39, %40, %41, %42 in 0 : vector<1x8x8xf32>, vector<1x8x8xf32>, vector<1x8x8xf32>, vector<1x8x8xf32> -> vector<4x8x8xf32>
    %44 = arith.truncf %43 : vector<4x8x8xf32> to vector<4x8x8xbf16>
    %cst_13 = arith.constant dense<0.000000e+00> : vector<4x8x8xf32>
    %45 = tpu.matmul %22, %33, %cst_13 {dimension_numbers = #tpu.dot_dimension_numbers<[2], [2], [1], [1], [0, 0, 0, 1, 1, 1], [0], [0]>} : vector<4x8x8xbf16>, vector<4x8x8xbf16>, vector<4x8x8xf32> -> vector<4x8x8xf32>
    %cst_14 = arith.constant dense<0xFF800000> : vector<4x8xf32>
    %46 = vector.multi_reduction <maximumf>, %45, %cst_14 [2] : vector<4x8x8xf32> to vector<4x8xf32>
    %47 = vector.shape_cast %46 : vector<4x8xf32> to vector<4x8x1xf32>
    %48 = vector.broadcast %47 : vector<4x8x1xf32> to vector<4x8x8xf32>
    %49 = arith.subf %45, %48 : vector<4x8x8xf32>
    %50 = math.exp %49 : vector<4x8x8xf32>
    %cst_15 = arith.constant dense<0.000000e+00> : vector<4x8xf32>
    %51 = vector.multi_reduction <add>, %50, %cst_15 [2] : vector<4x8x8xf32> to vector<4x8xf32>
    %52 = vector.shape_cast %51 : vector<4x8xf32> to vector<4x8x1xf32>
    %53 = tpu.reciprocal %52 {approx = true} : vector<4x8x1xf32> -> vector<4x8x1xf32>
    %54 = vector.broadcast %53 : vector<4x8x1xf32> to vector<4x8x8xf32>
    %55 = arith.mulf %50, %54 : vector<4x8x8xf32>
    %56 = arith.truncf %55 : vector<4x8x8xf32> to vector<4x8x8xbf16>
    %cst_16 = arith.constant dense<0.000000e+00> : vector<4x8x8xf32>
    %57 = tpu.matmul %56, %44, %cst_16 {dimension_numbers = #tpu.dot_dimension_numbers<[2], [1], [1], [2], [0, 0, 0, 1, 1, 2], [0], [0]>} : vector<4x8x8xbf16>, vector<4x8x8xbf16>, vector<4x8x8xf32> -> vector<4x8x8xf32>
    %58 = arith.truncf %57 : vector<4x8x8xf32> to vector<4x8x8xbf16>
    %c0_17 = arith.constant 0 : index
    %c0_18 = arith.constant 0 : index
    %c0_19 = arith.constant 0 : index
    %59 = vector.load %arg4[%c0_17, %c0_18, %c0_19] : memref<4x8x32xbf16, #tpu.memory_space<vmem>>, vector<4x8x32xbf16>
    %cst_20 = arith.constant dense<0.000000e+00> : vector<4x8x32xf32>
    %60 = tpu.matmul %58, %59, %cst_20 {dimension_numbers = #tpu.dot_dimension_numbers<[2], [1], [1], [2], [0, 0, 0, 1, 1, 2], [0], [0]>} : vector<4x8x8xbf16>, vector<4x8x32xbf16>, vector<4x8x32xf32> -> vector<4x8x32xf32>
    %cst_21 = arith.constant dense<0.000000e+00> : vector<8x32xf32>
    %61 = vector.multi_reduction <add>, %60, %cst_21 [0] : vector<4x8x32xf32> to vector<8x32xf32>
    %c0_22 = arith.constant 0 : index
    %c0_23 = arith.constant 0 : index
    %62 = vector.load %arg5[%c0_22, %c0_23] : memref<1x32xf32, #tpu.memory_space<vmem>>, vector<1x32xf32>
    %63 = vector.broadcast %62 : vector<1x32xf32> to vector<8x32xf32>
    %64 = arith.addf %61, %63 : vector<8x32xf32>
    %c0_24 = arith.constant 0 : index
    %c0_25 = arith.constant 0 : index
    %c0_26 = arith.constant 0 : index
    %65 = vector.load %arg6[%c0_24, %c0_25, %c0_26] : memref<1x8x32xf32, #tpu.memory_space<vmem>>, vector<1x8x32xf32>
    %66 = vector.shape_cast %65 : vector<1x8x32xf32> to vector<8x32xf32>
    %67 = vector.shape_cast %64 : vector<8x32xf32> to vector<1x8x32xf32>
    tpu.vector_store %arg6[%c0_24, %c0_25, %c0_26], %67 {strides = array<i32>} : memref<1x8x32xf32, #tpu.memory_space<vmem>>, vector<1x8x32xf32>,
    return
  }
  func.func @transform_0(%arg0: i32) -> (i32, i32, i32) {
    %c0_i32 = arith.constant 0 : i32
    %c0_i32_0 = arith.constant 0 : i32
    %c0_i32_1 = arith.constant 0 : i32
    return %arg0, %c0_i32, %c0_i32_0 : i32, i32, i32
  }
  func.func @transform_1(%arg0: i32) -> (i32, i32) {
    %c0_i32 = arith.constant 0 : i32
    %c0_i32_0 = arith.constant 0 : i32
    %c0_i32_1 = arith.constant 0 : i32
    return %c0_i32, %c0_i32_0 : i32, i32
  }
  func.func @transform_2(%arg0: i32) -> (i32, i32) {
    %c0_i32 = arith.constant 0 : i32
    %c0_i32_0 = arith.constant 0 : i32
    %c0_i32_1 = arith.constant 0 : i32
    return %c0_i32, %c0_i32_0 : i32, i32
  }
  func.func @transform_3(%arg0: i32) -> (i32, i32, i32) {
    %c0_i32 = arith.constant 0 : i32
    %c0_i32_0 = arith.constant 0 : i32
    %c0_i32_1 = arith.constant 0 : i32
    %c0_i32_2 = arith.constant 0 : i32
    return %c0_i32, %c0_i32_0, %c0_i32_1 : i32, i32, i32
  }
  func.func @transform_4(%arg0: i32) -> (i32, i32) {
    %c0_i32 = arith.constant 0 : i32
    %c0_i32_0 = arith.constant 0 : i32
    %c0_i32_1 = arith.constant 0 : i32
    return %c0_i32, %c0_i32_0 : i32, i32
  }
  func.func @transform_5(%arg0: i32) -> (i32, i32, i32) {
    %c0_i32 = arith.constant 0 : i32
    %c0_i32_0 = arith.constant 0 : i32
    %c0_i32_1 = arith.constant 0 : i32
    return %arg0, %c0_i32, %c0_i32_0 : i32, i32, i32
  }
}

</mosaic_0001>

<bundles_post_ra>
// kernel: multi_head_attention_1d.1
= control target key start
LH: loop header
LB: loop body
LE: loop exit
PB: predicated region body
PF: predicated region fallthrough
CT: control target
= control target key end

     0   :  { %10 = vsyncpa [#allocation4], 0  ;;  %s1903_s0 = inlined_call_operand.hbm [shape: f32[2,8,37], index: 0, kind: input, shape index: {}]   ;;  %s1904_s1 = inlined_call_operand.hbm [shape: bf16[40,96], index: 1, kind: input, shape index: {}]   ;;  %s1905_s2 = inlined_call_operand.vmem [shape: f32[1,96], index: 2, kind: input, shape index: {}]   ;;  %s1906_s3 = inlined_call_operand.hbm [shape: bf16[4,8,32], index: 3, kind: input, shape index: {}]   ;;  %s1907_s4 = inlined_call_operand.hbm [shape: f32[1,32], index: 4, kind: input, shape index: {}]   ;;  %s1908_s5 = inlined_call_operand.hbm [shape: f32[2,8,32], index: 5, kind: output, shape index: {}]  }
   0x1   :  { %12 = vsyncpa [#allocation4 + $0x1], 0 }
   0x2   :  { %13 = vsyncpa [#allocation7], 0 }
   0x3   :  { %14 = vsyncpa [#allocation10], 0 }
   0x4   :  { %15 = vsyncpa [#allocation5], 0 }
   0x5   :  { %17 = vsyncpa [#allocation5 + $0x1], 0  ;;  %s1615_s18 = smov 0   ;;  %s1617_s19 = smov 0  }
   0x6   :  { %s1619_s20 = smov 0   ;;  %s1621_s21 = smov 0  }
   0x7 LB: > { %s1636_s22 = sadd.s32 4294967295, %s1568_s21   ;;  %s1138_s23 = sadd.s32 4294967294, %s1568_s21   ;;  %s1568_s21 = sphi %s1621_s21, %s1932_s21   ;;  %s1564_s20 = sphi %s1619_s20, %s1931_s20   ;;  %s1560_s19 = sphi %s1617_s19, %s1930_s19   ;;  %s1556_s18 = sphi %s1615_s18, %s1929_s18  }
   0x8   : > { %p43_p0 = scmp.ne.s32.totalorder %s1560_s19, %s1556_s18  ;;  %p1909_p1 = scmp.eq.s32.totalorder %s1636_s22, 0 }
   0x9   : > { %p157_p3 = scmp.eq.s32.totalorder %s1138_s23, 1  ;;  %p1139_p5 = scmp.ge.s32.totalorder %s1568_s21, 1 }
   0xa   : > { %p1645_p4 = por %p1909_p1, %p43_p0  ;;  %p164_p7 = scmp.lt.s32.totalorder %s1568_s21, 3 }
   0xb   : > { %p1650_p6 = por %p157_p3, %p43_p0  ;;  %s1570_s27 = smov [#allocation6]  }
   0xc   : > { %s1913_s24 = scalar_select %p1645_p4, 1, 0 }
   0xd   : > { %s1914_s25 = scalar_select %p1650_p6, 1, 0 }
   0xe   : > { %p1655_p8 = pnand %p1139_p5, %p164_p7  ;;  %s176_s28 = sshll.u32 %s1570_s27, 4  ;;  %s177_s28 = int_to_ptr.vmem [resolvable:$true] %s176_s28 }
   0xf   : > { %s1571_s30 = smov [#allocation8]   ;;  %s1572_s7 = smov [#allocation9]  }
  0x10   : > { %s1915_s26 = scalar_select %p1655_p8, 1, 0 }
  0x11   : > { %p1300_p9 = pneg %p1655_p8  ;;  %s192_s6 = sshll.u32 %s1571_s30, 4  ;;  %s193_s6 = int_to_ptr.vmem [resolvable:$true] %s192_s6 }
  0x12   : > { %s206_s8 = sshll.u32 %s1572_s7, 4  ;;  %s1401_s9 = scalar_lea.vmem %s177_s28, 320  ;;  %s207_s8 = int_to_ptr.vmem [resolvable:$true] %s206_s8 }
  0x13   : > { %p1664_p11 = pnand %p1300_p9, %p1909_p1  ;;  %p1402_p13 = scmp.ne.s32.totalorder %s177_s28, %s1401_s9 }
  0x14   : > { %p1409_p5 = scmp.lt.s32.totalorder %s177_s28, %s177_s28  ;;  %p1410_p7 = scmp.lt.s32.totalorder %s1401_s9, %s1401_s9 }
  0x15   : > { %p1392_p12 = pneg %p1664_p11 }
  0x16   : > { %p1411_p9 = por %p1410_p7, %p1409_p5 }
  0x17   : > { %p1404_p0 = pnand %p1402_p13, %p1392_p12 }
  0x19   : > { %p1405_p3 = pneg %p1404_p0 }
  0x1b   : > { %p1412_p10 = pnand %p1411_p9, %p1405_p3 }
  0x1d   : > { %1415 = shalt.err (!%p1412_p10)
}
  0x1e   : > { %s1573_s10 = smov 64   ;;  %s1574_s11 = smov 4  }
  0x1f   : > { %1303 = dma.hbm_to_vmem [thread:$0]  (!%p1664_p11), %s1904_s1, 320, %s177_s28, [#allocation7], %s1573_s10, %s1573_s10, %s1574_s11  }
  0x20   : > { %s1427_s14 = scalar_lea.vmem %s193_s6, 256  ;;  %p1435_p2 = scmp.lt.s32.totalorder %s193_s6, %s193_s6 }
  0x21   : > { %p1428_p1 = scmp.ne.s32.totalorder %s193_s6, %s1427_s14  ;;  %p1436_p6 = scmp.lt.s32.totalorder %s1427_s14, %s1427_s14 }
  0x23   : > { %p1430_p13 = pnand %p1428_p1, %p1392_p12  ;;  %p1437_p5 = por %p1436_p6, %p1435_p2 }
  0x25   : > { %p1431_p0 = pneg %p1430_p13 }
  0x27   : > { %p1438_p3 = pnand %p1437_p5, %p1431_p0 }
  0x29   : > { %1441 = shalt.err (!%p1438_p3)
}
  0x2a   : > { %1306 = dma.hbm_to_vmem [thread:$0]  (!%p1664_p11), %s1906_s3, 256, %s193_s6, [#allocation7], %s1573_s10, %s1573_s10, %s1574_s11  }
  0x2b   : > { %s1453_s17 = scalar_lea.vmem %s207_s8, 16  ;;  %s1460_s23 = scalar_lea.vmem %s207_s8, 32 }
  0x2c   : > { %p1454_p10 = scmp.ne.s32.totalorder %s207_s8, %s1453_s17  ;;  %p1461_p9 = scmp.lt.s32.totalorder %s207_s8, %s207_s8 }
  0x2d   : > { %p1462_p13 = scmp.lt.s32.totalorder %s1460_s23, %s1453_s17 }
  0x2e   : > { %p1456_p7 = pnand %p1454_p10, %p1392_p12 }
  0x2f   : > { %p1463_p2 = por %p1462_p13, %p1461_p9 }
  0x30   : > { %p1457_p1 = pneg %p1456_p7 }
  0x32   : > { %p1464_p6 = pnand %p1463_p2, %p1457_p1 }
  0x34   : > { %1467 = shalt.err (!%p1464_p6)
}
  0x35   : > { %1309 = dma.hbm_to_vmem [thread:$0]  (!%p1664_p11), %s1907_s4, 16, %s207_s8, [#allocation10]  }
  0x36   : > { %s1695_s30 = sadd.s32 1, %s1568_s21   ;;  %s30_s29 = sadd.s32 1, %s1564_s20 }
  0x37   : > { %s27_s6 = ssub.s32 %s1568_s21, %s1695_s30  ;;  %p37_p0 = scmp.ne.s32.totalorder %s1564_s20, %s1560_s19 }
  0x38   : > { %p28_p12 = scmp.eq.s32.totalorder %s27_s6, 0  ;;  %p38_p5 = scmp.eq.s32.totalorder %s1568_s21, 0 }
  0x39   : > { %p1321_p3 = scmp.lt.s32.totalorder %s1568_s21, 2  ;;  %p1917_p7 = scmp.eq.s32.totalorder %s1636_s22, 1 }
  0x3a   : > { %s1705_s7 = scalar_select %p28_p12, %s1564_s20, %s30_s29  }
  0x3b   : > { %p39_p10 = por %p38_p5, %p37_p0  ;;  %p1709_p1 = por %p1917_p7, %p37_p0 }
  0x3c   : > { %s217_s10 = sand.u32 1, %s1564_s20   ;;  %s1145_s11 = sshll.u32 %s1568_s21, 7 }
  0x3d   : > { %s1918_s9 = scalar_select %p1709_p1, 1, 0 }
  0x3e   : > { %s1144_s8 = sshll.u32 %s217_s10, 3  ;;  %s1718_s14 = scalar_lea.hbm %s1903_s0, %s1145_s11 }
  0x3f   : > { %s221_s15 = scalar_lea.vmem [#allocation3], %s1144_s8  ;;  %p1720_p11 = pnand %p1321_p3, %p39_p10 }
  0x40   : > { %s228_s16 = sshll.u32 %s221_s15, 4  ;;  %s218_s23 = scalar_lea.sflag [#allocation4], %s217_s10  ;;  %s229_s16 = int_to_ptr.vmem [resolvable:$true] %s228_s16 }
  0x41   : > { %s1468_s27 = scalar_lea.hbm %s1718_s14, 128  ;;  %p1470_p13 = pneg %p1720_p11 }
  0x42   : > { %p1469_p9 = scmp.ne.s32.totalorder %s1718_s14, %s1468_s27  ;;  %s1473_s29 = scalar_lea.hbm %s1903_s0, 256 }
  0x43   : > { %p1474_p12 = scmp.lt.s32.totalorder %s1718_s14, %s1903_s0  ;;  %p1475_p0 = scmp.lt.s32.totalorder %s1473_s29, %s1468_s27 }
  0x44   : > { %p1471_p2 = pnand %p1470_p13, %p1469_p9 }
  0x45   : > { %p1476_p5 = por %p1475_p0, %p1474_p12 }
  0x46   : > { %p1472_p6 = pneg %p1471_p2 }
  0x48   : > { %p1477_p3 = pnand %p1476_p5, %p1472_p6 }
  0x4a   : > { %1480 = shalt.err (!%p1477_p3)
}
  0x4b   : > { %s1481_s12 = scalar_lea.vmem %s229_s16, 128  ;;  %s1575_s10 = smov [#allocation3]  }
  0x4c   : > { %p1482_p10 = scmp.ne.s32.totalorder %s229_s16, %s1481_s12  ;;  %s1486_s13 = sshll.u32 %s1575_s10, 4  ;;  %s1487_s13 = int_to_ptr.vmem [resolvable:$false] %s1486_s13 }
  0x4d   : > { %s1488_s15 = scalar_lea.vmem %s1487_s13, 256  ;;  %p1489_p9 = scmp.lt.s32.totalorder %s229_s16, %s1487_s13 }
  0x4e   : > { %p1484_p7 = pnand %p1482_p10, %p1470_p13  ;;  %p1490_p2 = scmp.lt.s32.totalorder %s1488_s15, %s1481_s12 }
  0x50   : > { %p1485_p1 = pneg %p1484_p7  ;;  %p1491_p4 = por %p1490_p2, %p1489_p9 }
  0x52   : > { %p1492_p8 = pnand %p1491_p4, %p1485_p1 }
  0x54   : > { %1495 = shalt.err (!%p1492_p8)
}
  0x55   : > { %1313 = dma.hbm_to_vmem [thread:$0]  (!%p1720_p11), %s1718_s14, 128, %s229_s16, %s218_s23  }
  0x56   : > { %p1920_p6 = scmp.ne.s32.totalorder %s1915_s26, 0 }
  0x57   : > { %s1741_s27 = sand.u32 (!%p1920_p6), 1, %s1560_s19   ;;  %p1921_p4 = scmp.ne.s32.totalorder (!%p1920_p6), %s1913_s24, 0 }
  0x58   : > { %237 = sbr.rel (%p1920_p6) target bundleno = 1471 (0x5bf), region = 40  ;;  %s1147_s28 = sshll.u32 (!%p1920_p6), %s1741_s27, 3 }
  0x59   : > { %s240_s6 = scalar_lea.sflag (!%p1920_p6), [#allocation4], %s1741_s27  ;;  %s243_s29 = scalar_lea.vmem (!%p1920_p6), [#allocation3], %s1147_s28 }
  0x5d   : > { %1539 = dma.done.wait (%p1921_p4), %s240_s6, 128  }
  0x5e   : > { %1541 = vsyncadd (%p1921_p4), %s240_s6, 4294967168  ;;  %p1922_p8 = scmp.eq.s32.totalorder %s1636_s22, 0 }
  0x60   : > { %1543 = dma.done.wait (%p1922_p8), [#allocation7], 576   ;;  %p1923_p1 = pmov %p1922_p8 }
  0x62   : > { %1545 = vsyncadd (%p1923_p1), [#allocation7], 4294966720  ;;  %p1924_p11 = pmov %p1923_p1 }
  0x63   : > { %p1925_p13 = pmov %p1923_p1 }
  0x64   : > { %1547 = dma.done.wait (%p1924_p11), [#allocation10], 16  }
  0x65   : > { %1549 = vsyncadd (%p1925_p13), [#allocation10], 4294967280  ;;  %vm283_vm0 = vcmask 322560   ;;  %v1576_v0 = vmov 0.0   ;;  %vm1577_vm1 = vmmov 0   ;;  %v1578_v1 = vmov 0  }
  0x66   : > { %1202 = vmatprep.subr.bf16.mxu0 %v1576_v0  ;;  %1208 = vmatprep.mubr.msk.bf16.mxu0 %vm1577_vm1, %v1576_v0  ;;  %284 = vst.msk [vmem:[#allocation2] sm:$0xf] %vm283_vm0, %v1578_v1  ;;  %vm321_vm2 = vcmask 1043456   ;;  %v1371_v2 = vld [vmem:[#allocation6 + $0x10] ss:$0 sps:$4 sm:$0xff]   ;;  %vm287_vm3 = vcmask 297984  }
  0x67   : > { %1212 = vmatprep.subr.bf16.mxu1 %v1576_v0  ;;  %1214 = vmatprep.mubr.msk.bf16.mxu1 %vm1577_vm1, %v1576_v0  ;;  %v323_v3 = vsel %vm321_vm2, %v1371_v2, 0  ;;  %v285_v4 = vld [vmem:[%s243_s29] sm:$0xff]  ;;  %v1372_v5 = vld [vmem:[#allocation6 + $0x8] sm:$0xff]   ;;  %v1373_v7 = vld [vmem:[#allocation6] sm:$0xff]   ;;  %vm317_vm4 = vcmask 326656   ;;  %s1579_s14 = smov 104  }
  0x68   : > { %1203 = vmatpush3.bf16.msra.mxu0 %v323_v3  ;;  %v286_v6 = vpack.c.bf16 %v285_v4, %v285_v4  ;;  %v1152_v9 = vld [vmem:[%s1905_s2] ss:$0 sm:$0xff]  ;;  %s1580_s16 = smov 120   ;;  %s1581_s17 = smov 112   ;;  %vm382_vm5 = vcmask 64512   ;;  %vm1008_vm6 = vcmask 261120  }
  0x69   : > { %1204 = vmatprep.subr.bf16.mxu0 %v1576_v0  ;;  %s1582_s23 = smov 96   ;;  %s1583_s11 = smov 64  }
  0x6a   : > { %288 = vst.msk [vmem:[#allocation2] sm:$0xf] %vm287_vm3, %v286_v6  ;;  %s1171_s8 = sshll.u32 %s1636_s22, 7  ;;  %s281_s12 = scalar_lea.vmem [#allocation11], %s1147_s28 }
  0x6b   : > { %s1039_s10 = sshll.u32 %s281_s12, 4  ;;  %s1865_s6 = scalar_lea.hbm %s1908_s5, %s1171_s8  ;;  %s1040_s10 = int_to_ptr.vmem [resolvable:$true] %s1039_s10 }
  0x6c   : > { %1205 = vmatpush3.bf16.msra.mxu0 %v1372_v5  ;;  %s1026_s29 = scalar_lea.sflag [#allocation5], %s1741_s27  ;;  %s1496_s24 = scalar_lea.vmem %s1040_s10, 128 }
  0x6d   : > { %1206 = vmatprep.subr.bf16.mxu0 %v1576_v0  ;;  %p1497_p12 = scmp.ne.s32.totalorder %s1040_s10, %s1496_s24  ;;  %p1926_p0 = scmp.ne.s32.totalorder %s1918_s9, 0 }
  0x6e   : > { %s1584_s22 = smov [#allocation11]  }
  0x6f   : > { %p1498_p5 = pnand %p1497_p12, %p1926_p0  ;;  %s1500_s28 = sshll.u32 %s1584_s22, 4  ;;  %s1501_s28 = int_to_ptr.vmem [resolvable:$false] %s1500_s28 }
  0x70   : > { %1207 = vmatpush3.bf16.msra.mxu0 %v1373_v7  ;;  %s1502_s26 = scalar_lea.vmem %s1501_s28, 256  ;;  %p1503_p10 = scmp.lt.s32.totalorder %s1040_s10, %s1501_s28 }
  0x71   : > { %v289_v8 = vld [vmem:[#allocation2] sm:$0xf]  ;;  %1224 = vmatprep.subr.bf16.mxu0 %v1576_v0  ;;  %p1499_p3 = pneg %p1498_p5  ;;  %p1504_p7 = scmp.lt.s32.totalorder %s1502_s26, %s1496_s24 }
  0x73   : > { %1209 = vmatmul.mubr.msk.bf16.vlgmr.msra.gmra.mxu0 %vm317_vm4, %v289_v8  ;;  %p1505_p9 = por %p1504_p7, %p1503_p10 }
  0x74   : > { %1226 = vmatprep.mubr.msk.bf16.mxu0 %vm1577_vm1, %v1576_v0 }
  0x75   : > { %p1506_p2 = pnand %p1505_p9, %p1499_p3 }
 0x133   : > { %v359_v10 = vpop.f32.mrf.mxu0 }
 0x134   : > { %v360_v11 = vadd.f32 %v1152_v9, %v359_v10 }
 0x135   : > { %v1210_v12 = vpop.f32.mrf.mxu0 }
 0x136   : > { %372 = vrot.lane.b32.xlu1 %v360_v11, %s1579_s14  ;;  %366 = vrot.lane.b32.xlu0 %v360_v11, %s1580_s16  ;;  %v1774_v14 = vpack.c.bf16 %v360_v11, %v360_v11 }
 0x137   : > { %v362_v13 = vpop.f32.mrf.mxu0 }
 0x139   : > { %v1211_v15 = vpop.f32.mrf.mxu0 }
 0x13a   : > { %369 = vrot.lane.b32.xlu0 %v360_v11, %s1581_s17  ;;  %380 = vrot.lane.b32.xlu1 %v1774_v14, %s1582_s23 }
 0x1a8   : > { %v373_v16 = vpop.permute.xlu1 %372  ;;  %v367_v17 = vpop.permute.xlu0 %366 }
 0x1a9   : > { %v376_v18 = vpack.c.bf16 %v367_v17, %v367_v17  ;;  %v1777_v21 = vpack.c.bf16 %v373_v16, %v373_v16 }
 0x1ab   : > { %430 = vrot.lane.b32.xlu0 %v376_v18, %s1582_s23 }
 0x1ac   : > { %v370_v19 = vpop.permute.xlu0 %369  ;;  %v381_v20 = vpop.permute.xlu1 %380 }
 0x1ad   : > { %v1779_v22 = vpack.c.bf16 %v370_v19, %v370_v19  ;;  %v387_v23 = vsel %vm382_vm5, %v381_v20, 0 }
 0x1ae   : > { %1213 = vmatpush3.bf16.xpose.msra.mxu1 %v387_v23 }
 0x1af   : > { %528 = vrot.lane.b32.xlu0 %v1777_v21, %s1582_s23  ;;  %479 = vrot.lane.b32.xlu1 %v1779_v22, %s1582_s23 }
 0x1b0   : > { %1218 = vmatprep.subr.bf16.mxu1 %v1576_v0 }
 0x1b5   : > { %1215 = vmatmul.mubr.msk.bf16.vlgmr.msra.gmra.mxu1 %vm382_vm5, %v1774_v14 }
 0x1b6   : > { %1220 = vmatprep.mubr.msk.bf16.mxu1 %vm1577_vm1, %v1576_v0 }
 0x21d   : > { %v431_v24 = vpop.permute.xlu0 %430 }
 0x21e   : > { %v436_v25 = vsel %vm382_vm5, %v431_v24, 0 }
 0x21f   : > { %1219 = vmatpush3.bf16.xpose.msra.mxu1 %v436_v25  ;;  %v820_v25 = vld [vmem:[#allocation8] sm:$0xf] }
 0x220   : > { %1230 = vmatprep.subr.bf16.mxu1 %v1576_v0 }
 0x221   : > { %v480_v26 = vpop.permute.xlu1 %479  ;;  %v529_v28 = vpop.permute.xlu0 %528 }
 0x222   : > { %v485_v27 = vsel %vm382_vm5, %v480_v26, 0  ;;  %v534_v29 = vsel %vm382_vm5, %v529_v28, 0 }
 0x223   : > { %1225 = vmatpush3.bf16.xpose.msra.mxu0 %v485_v27 }
 0x224   : > { %1236 = vmatprep.subr.bf16.mxu0 %v1576_v0 }
 0x226   : > { %1221 = vmatmul.mubr.msk.bf16.vlgmr.msra.gmra.mxu1 %vm382_vm5, %v376_v18 }
 0x227   : > { %1231 = vmatpush3.bf16.xpose.msra.mxu1 %v534_v29  ;;  %1232 = vmatprep.mubr.msk.bf16.mxu1 %vm1577_vm1, %v1576_v0  ;;  %v828_v29 = vsel %vm321_vm2, %v820_v25, 0 }
 0x228   : > { %1242 = vmatprep.subr.bf16.mxu1 %v1576_v0 }
 0x22a   : > { %1227 = vmatmul.mubr.msk.bf16.vlgmr.msra.gmra.mxu0 %vm382_vm5, %v1779_v22 }
 0x22b   : > { %1238 = vmatprep.mubr.msk.bf16.mxu0 %vm1577_vm1, %v1576_v0 }
 0x22e   : > { %1233 = vmatmul.mubr.msk.bf16.vlgmr.msra.gmra.mxu1 %vm382_vm5, %v1777_v21 }
 0x22f   : > { %1244 = vmatprep.mubr.msk.bf16.mxu1 %vm1577_vm1, %v1576_v0 }
 0x275   : > { %v423_v30 = vpop.f32.mrf.mxu1 }
 0x276   : > { %v576_v31 = vsel %vm382_vm5, %v423_v30, -inf }
 0x277   : > { %577 = vmax.xlane.f32.xlu1 %v576_v31  ;;  %v1216_v32 = vpop.f32.mrf.mxu1  ;;  %v821_v31 = vld [vmem:[#allocation8 + $0x4] sm:$0xf] }
 0x279   : > { %v426_v33 = vpop.f32.mrf.mxu1 }
 0x27b   : > { %v1217_v34 = vpop.f32.mrf.mxu1 }
 0x27c   : > { %v874_v34 = vsel %vm321_vm2, %v821_v31, 0 }
 0x2e6   : > { %v472_v35 = vpop.f32.mrf.mxu1 }
 0x2e7   : > { %v579_v36 = vsel %vm382_vm5, %v472_v35, -inf }
 0x2e8   : > { %580 = vmax.xlane.f32.xlu0 %v579_v36  ;;  %v1222_v37 = vpop.f32.mrf.mxu1 }
 0x2ea   : > { %v475_v38 = vpop.f32.mrf.mxu1  ;;  %v521_v39 = vpop.f32.mrf.mxu0 }
 0x2eb   : > { %v582_v40 = vsel %vm382_vm5, %v521_v39, -inf }
 0x2ec   : > { %v1223_v41 = vpop.f32.mrf.mxu1  ;;  %583 = vmax.xlane.f32.xlu0 %v582_v40  ;;  %v1228_v42 = vpop.f32.mrf.mxu0 }
 0x2ed   : > { %v823_v42 = vld [vmem:[#allocation8 + $0xc] sm:$0xf] }
 0x2ee   : > { %v524_v43 = vpop.f32.mrf.mxu0  ;;  %v570_v44 = vpop.f32.mrf.mxu1 }
 0x2ef   : > { %v585_v45 = vsel %vm382_vm5, %v570_v44, -inf }
 0x2f0   : > { %586 = vmax.xlane.f32.xlu1 %v585_v45  ;;  %v1229_v46 = vpop.f32.mrf.mxu0  ;;  %v1234_v47 = vpop.f32.mrf.mxu1  ;;  %v966_v45 = vsel %vm321_vm2, %v823_v42, 0 }
 0x2f2   : > { %v573_v48 = vpop.f32.mrf.mxu1 }
 0x2f4   : > { %v1235_v49 = vpop.f32.mrf.mxu1 }
 0x300   : > { %v578_v50 = vpop.xlane.xlu1 %577 }
 0x301   : > { %v588_v51 = vsub.f32 %v423_v30, %v578_v50  ;;  %672 = vrot.lane.b32.xlu1 %v376_v18, %s1583_s11 }
 0x303   : > { %v592_v52 = vmul.f32 1.442695, %v588_v51 }
 0x305   : > { %1374 = vpow2.f32 %v592_v52 }
 0x312   : > { %v1375_v53 = vpop.eup %1374 }
 0x313   : > { %v600_v54 = vsel %vm382_vm5, %v1375_v53, 0.0 }
 0x314   : > { %601 = vadd.xlane.f32.xlu0 %v600_v54 }
 0x32a   : > { %624 = vrot.lane.b32.xlu0 %v1774_v14, %s1583_s11 }
 0x371   : > { %v581_v55 = vpop.xlane.xlu0 %580 }
 0x372   : > { %v589_v56 = vsub.f32 %v472_v35, %v581_v55  ;;  %v822_v35 = vld [vmem:[#allocation8 + $0x8] sm:$0xf] }
 0x373   : > { %v920_v38 = vsel %vm321_vm2, %v822_v35, 0 }
 0x374   : > { %v594_v57 = vmul.f32 1.442695, %v589_v56 }
 0x375   : > { %v584_v58 = vpop.xlane.xlu0 %583 }
 0x376   : > { %1376 = vpow2.f32 %v594_v57  ;;  %v590_v59 = vsub.f32 %v521_v39, %v584_v58 }
 0x378   : > { %v596_v60 = vmul.f32 1.442695, %v590_v59 }
 0x379   : > { %v587_v61 = vpop.xlane.xlu1 %586 }
 0x37a   : > { %1378 = vpow2.f32 %v596_v60  ;;  %v591_v62 = vsub.f32 %v570_v44, %v587_v61 }
 0x37c   : > { %v598_v63 = vmul.f32 1.442695, %v591_v62 }
 0x37d   : > { %v673_v1 = vpop.permute.xlu1 %672 }
 0x37e   : > { %1380 = vpow2.f32 %v598_v63  ;;  %v678_v2 = vsel %vm321_vm2, %v673_v1, 0 }
 0x37f   : > { %1243 = vmatpush3.bf16.msra.mxu1 %v678_v2 }
 0x380   : > { %1254 = vmatprep.subr.bf16.mxu1 %v1576_v0 }
 0x383   : > { %v1377_v3 = vpop.eup %1376 }
 0x384   : > { %v603_v4 = vsel %vm382_vm5, %v1377_v3, 0.0 }
 0x385   : > { %604 = vadd.xlane.f32.xlu1 %v603_v4 }
 0x387   : > { %v1379_v5 = vpop.eup %1378 }
 0x388   : > { %v606_v6 = vsel %vm382_vm5, %v1379_v5, 0.0 }
 0x389   : > { %607 = vadd.xlane.f32.xlu0 %v606_v6 }
 0x38b   : > { %v1381_v7 = vpop.eup %1380 }
 0x38c   : > { %v609_v8 = vsel %vm382_vm5, %v1381_v7, 0.0 }
 0x38d   : > { %610 = vadd.xlane.f32.xlu1 %v609_v8 }
 0x39d   : > { %v602_v9 = vpop.xlane.xlu0 %601 }
 0x39e   : > { %1382 = vrcp.f32 %v602_v9  ;;  %720 = vrot.lane.b32.xlu1 %v1779_v22, %s1583_s11 }
 0x39f   : > { %768 = vrot.lane.b32.xlu0 %v1777_v21, %s1583_s11 }
 0x3a1   : > { %v625_v10 = vpop.permute.xlu0 %624 }
 0x3a2   : > { %v630_v11 = vsel %vm321_vm2, %v625_v10, 0 }
 0x3a3   : > { %1237 = vmatpush3.bf16.msra.mxu0 %v630_v11 }
 0x3a4   : > { %1248 = vmatprep.subr.bf16.mxu0 %v1576_v0 }
 0x3ab   : > { %v1383_v12 = vpop.eup %1382 }
 0x3ac   : > { %v616_v13 = vmul.f32 %v1383_v12, %v1375_v53 }
 0x3ae   : > { %v620_v14 = vpack.c.bf16 %v616_v13, %v616_v13  ;;  %v1169_v13 = vld [vmem:[#allocation9] ss:$0 sm:$0xff] }
 0x3b0   : > { %1239 = vmatmul.mubr.msk.bf16.vlgmr.msra.gmra.mxu0 %vm382_vm5, %v620_v14 }
 0x3b1   : > { %1250 = vmatprep.mubr.msk.bf16.mxu0 %vm1577_vm1, %v1576_v0 }
 0x40e   : > { %v605_v15 = vpop.xlane.xlu1 %604 }
 0x40f   : > { %1384 = vrcp.f32 %v605_v15 }
 0x412   : > { %v608_v16 = vpop.xlane.xlu0 %607 }
 0x413   : > { %1386 = vrcp.f32 %v608_v16 }
 0x416   : > { %v611_v17 = vpop.xlane.xlu1 %610  ;;  %v769_v22 = vpop.permute.xlu0 %768 }
 0x417   : > { %1388 = vrcp.f32 %v611_v17  ;;  %v774_v26 = vsel %vm321_vm2, %v769_v22, 0 }
 0x41a   : > { %v721_v18 = vpop.permute.xlu1 %720 }
 0x41b   : > { %v726_v19 = vsel %vm321_vm2, %v721_v18, 0 }
 0x41c   : > { %v1385_v20 = vpop.eup %1384  ;;  %1249 = vmatpush3.bf16.msra.mxu0 %v726_v19 }
 0x41d   : > { %v617_v21 = vmul.f32 %v1385_v20, %v1377_v3  ;;  %1260 = vmatprep.subr.bf16.mxu0 %v1576_v0 }
 0x41f   : > { %v621_v23 = vpack.c.bf16 %v617_v21, %v617_v21 }
 0x420   : > { %v1387_v24 = vpop.eup %1386 }
 0x421   : > { %1245 = vmatmul.mubr.msk.bf16.vlgmr.msra.gmra.mxu1 %vm382_vm5, %v621_v23  ;;  %v618_v27 = vmul.f32 %v1387_v24, %v1379_v5 }
 0x422   : > { %1255 = vmatpush3.bf16.msra.mxu1 %v774_v26  ;;  %1256 = vmatprep.mubr.msk.bf16.mxu1 %vm1577_vm1, %v1576_v0 }
 0x423   : > { %v622_v28 = vpack.c.bf16 %v618_v27, %v618_v27  ;;  %1266 = vmatprep.subr.bf16.mxu1 %v1576_v0 }
 0x424   : > { %v1389_v30 = vpop.eup %1388 }
 0x425   : > { %1251 = vmatmul.mubr.msk.bf16.vlgmr.msra.gmra.mxu0 %vm382_vm5, %v622_v28  ;;  %v619_v32 = vmul.f32 %v1389_v30, %v1381_v7 }
 0x426   : > { %1261 = vmatpush3.bf16.msra.mxu0 %v828_v29  ;;  %1262 = vmatprep.mubr.msk.bf16.mxu0 %vm1577_vm1, %v1576_v0 }
 0x427   : > { %v623_v33 = vpack.c.bf16 %v619_v32, %v619_v32  ;;  %1272 = vmatprep.subr.bf16.mxu0 %v1576_v0 }
 0x429   : > { %1257 = vmatmul.mubr.msk.bf16.vlgmr.msra.gmra.mxu1 %vm382_vm5, %v623_v33 }
 0x42a   : > { %1267 = vmatpush3.bf16.msra.mxu1 %v874_v34  ;;  %1268 = vmatprep.mubr.msk.bf16.mxu1 %vm1577_vm1, %v1576_v0 }
 0x42b   : > { %1278 = vmatprep.subr.bf16.mxu1 %v1576_v0 }
 0x470   : > { %v666_v36 = vpop.f32.mrf.mxu0 }
 0x471   : > { %v816_v37 = vpack.c.bf16 %v666_v36, %v666_v36 }
 0x472   : > { %v1240_v39 = vpop.f32.mrf.mxu0 }
 0x473   : > { %1263 = vmatmul.mubr.msk.bf16.vlgmr.msra.gmra.mxu0 %vm382_vm5, %v816_v37 }
 0x474   : > { %v669_v40 = vpop.f32.mrf.mxu0  ;;  %1273 = vmatpush3.bf16.msra.mxu0 %v920_v38  ;;  %1274 = vmatprep.mubr.msk.bf16.mxu0 %vm1577_vm1, %v1576_v0 }
 0x476   : > { %v1241_v41 = vpop.f32.mrf.mxu0 }
 0x4e1   : > { %v714_v43 = vpop.f32.mrf.mxu1 }
 0x4e2   : > { %v817_v44 = vpack.c.bf16 %v714_v43, %v714_v43 }
 0x4e3   : > { %v1246_v46 = vpop.f32.mrf.mxu1 }
 0x4e4   : > { %1269 = vmatmul.mubr.msk.bf16.vlgmr.msra.gmra.mxu1 %vm382_vm5, %v817_v44 }
 0x4e5   : > { %v717_v47 = vpop.f32.mrf.mxu1  ;;  %v762_v48 = vpop.f32.mrf.mxu0  ;;  %1279 = vmatpush3.bf16.msra.mxu1 %v966_v45  ;;  %1280 = vmatprep.mubr.msk.bf16.mxu1 %vm1577_vm1, %v1576_v0 }
 0x4e6   : > { %v818_v49 = vpack.c.bf16 %v762_v48, %v762_v48 }
 0x4e7   : > { %v1247_v50 = vpop.f32.mrf.mxu1  ;;  %v1252_v51 = vpop.f32.mrf.mxu0 }
 0x4e8   : > { %1275 = vmatmul.mubr.msk.bf16.vlgmr.msra.gmra.mxu0 %vm382_vm5, %v818_v49 }
 0x4e9   : > { %v765_v52 = vpop.f32.mrf.mxu0  ;;  %v810_v53 = vpop.f32.mrf.mxu1 }
 0x4ea   : > { %v819_v54 = vpack.c.bf16 %v810_v53, %v810_v53 }
 0x4eb   : > { %v1253_v55 = vpop.f32.mrf.mxu0  ;;  %v1258_v56 = vpop.f32.mrf.mxu1 }
 0x4ec   : > { %1281 = vmatmul.mubr.msk.bf16.vlgmr.msra.gmra.mxu1 %vm382_vm5, %v819_v54 }
 0x4ed   : > { %v813_v57 = vpop.f32.mrf.mxu1 }
 0x4ef   : > { %v1259_v58 = vpop.f32.mrf.mxu1 }
 0x533   : > { %v864_v59 = vpop.f32.mrf.mxu0 }
 0x534   : > { %v1009_v4 = vsel %vm1008_vm6, %v864_v59, 0.0 }
 0x535   : > { %v1264_v60 = vpop.f32.mrf.mxu0 }
 0x537   : > { %v867_v61 = vpop.f32.mrf.mxu0 }
 0x539   : > { %v1265_v62 = vpop.f32.mrf.mxu0 }
 0x5a4   : > { %v910_v63 = vpop.f32.mrf.mxu1 }
 0x5a5   : > { %v1010_v1 = vsel %vm1008_vm6, %v910_v63, 0.0 }
 0x5a6   : > { %v1270_v0 = vpop.f32.mrf.mxu1  ;;  %v1011_v6 = vadd.f32 %v1010_v1, %v1009_v4 }
 0x5a8   : > { %v913_v2 = vpop.f32.mrf.mxu1  ;;  %v956_v3 = vpop.f32.mrf.mxu0 }
 0x5a9   : > { %v1012_v5 = vsel %vm1008_vm6, %v956_v3, 0.0 }
 0x5aa   : > { %v1271_v7 = vpop.f32.mrf.mxu1  ;;  %v1276_v8 = vpop.f32.mrf.mxu0  ;;  %v1013_v9 = vadd.f32 %v1012_v5, %v1011_v6 }
 0x5ac   : > { %v959_v10 = vpop.f32.mrf.mxu0  ;;  %v1002_v11 = vpop.f32.mrf.mxu1 }
 0x5ad   : > { %v1014_v12 = vsel %vm1008_vm6, %v1002_v11, 0.0 }
 0x5ae   : > { %v1015_v14 = vadd.f32 %v1014_v12, %v1013_v9  ;;  %v1277_v15 = vpop.f32.mrf.mxu0  ;;  %v1282_v16 = vpop.f32.mrf.mxu1 }
 0x5b0   : > { %v1023_v17 = vadd.f32 %v1169_v13, %v1015_v14  ;;  %v1005_v18 = vpop.f32.mrf.mxu1 }
 0x5b2   : > { %v1283_v19 = vpop.f32.mrf.mxu1  ;;  %1024 = vst.msk [vmem:[%s281_s12] sm:$0xff] %vm1008_vm6, %v1023_v17 }
 0x5b3   : > { %1509 = shalt.err (!%p1506_p2)
}
 0x5b4   : > { %s1510_s14 = scalar_lea.hbm %s1865_s6, 128  ;;  %s1514_s17 = scalar_lea.hbm %s1908_s5, 256 }
 0x5b5   : > { %p1511_p6 = scmp.ne.s32.totalorder %s1865_s6, %s1510_s14  ;;  %p1515_p1 = scmp.lt.s32.totalorder %s1865_s6, %s1908_s5 }
 0x5b6   : > { %p1516_p11 = scmp.lt.s32.totalorder %s1514_s17, %s1510_s14 }
 0x5b7   : > { %p1512_p4 = pnand %p1511_p6, %p1926_p0 }
 0x5b8   : > { %p1517_p13 = por %p1516_p11, %p1515_p1 }
 0x5b9   : > { %p1513_p8 = pneg %p1512_p4 }
 0x5bb   : > { %p1518_p12 = pnand %p1517_p13, %p1513_p8 }
 0x5bd   : > { %1521 = shalt.err (!%p1518_p12)
}
 0x5be   : > { %1298 = dma.vmem_to_hbm [thread:$0]  (%p1926_p0), %s1040_s10, 128, %s1865_s6, %s1026_s29  }
 0x5bf PF: > { %s1051_s8 = sand.u32 1, %s1556_s18   ;;  %p1927_p5 = scmp.ne.s32.totalorder %s1914_s25, 0 }
 0x5c0   : > { %p1928_p3 = scmp.ge.s32.totalorder %s1568_s21, 2  ;;  %s1052_s12 = scalar_lea.sflag [#allocation5], %s1051_s8 }
 0x5c2   : > { %p1315_p10 = pnand %p1928_p3, %p1927_p5 }
 0x5c4   : > { %p1316_p7 = pneg %p1315_p10 }
 0x5c6   : > { %1551 = dma.done.wait (%p1316_p7), %s1052_s12, 128  }
 0x5c7   : > { %1553 = vsyncadd (%p1316_p7), %s1052_s12, 4294967168  ;;  %p20_p9 = scmp.ge.s32.totalorder %s1695_s30, 4   ;;  %s1929_s18 = smov %s1560_s19 }
 0x5c8   : > { %s1930_s19 = smov %s1564_s20  ;;  %s1931_s20 = smov %s1705_s7 }
 0x5c9   : > { %s1932_s21 = smov %s1695_s30  ;;  %22 = sbr.rel (!%p20_p9) target bundleno = 7 (0x7), region = 97 }
 0x5ce   :  { %1057 = vsyncpa [#allocation4], 1 }
 0x5cf   :  { %1059 = vsyncpa [#allocation4 + $0x1], 1 }
 0x5d0   :  { %1060 = vsyncpa [#allocation7], 1 }
 0x5d1   :  { %1061 = vsyncpa [#allocation10], 1 }
 0x5d2   :  { %1062 = vsyncpa [#allocation5], 1 }
 0x5d3   :  { %1064 = vsyncpa [#allocation5 + $0x1], 1 }

</bundles_post_ra>
